<compile_context>
chip_gen: v5e
topology: v5e:2x2
jax: 0.10.0
libtpu: 0.0.40
codegen_flags: <defaults>
</compile_context>

<pallas_src>
import math

import jax
import jax.numpy as jnp
from jax.experimental import pallas as pl
from jax.experimental.pallas import tpu as pltpu


# --------------------------------------------------------------------------
# Kernels
# --------------------------------------------------------------------------
def _maybe_narrow(x, w_ref):
    """Static (trace-time) cast: feed the MXU the narrower operand dtype."""
    if w_ref.dtype.itemsize < x.dtype.itemsize:
        return x.astype(w_ref.dtype)
    return x


def _ffn_kernel(x_ref, w1_ref, b1_ref, w2_ref, b2_ref, o_ref, acc_ref):
    """Ungated FFN chunk k: acc += relu(x @ W1_k + b1_k) @ W2_k ; +b2 at end."""
    k = pl.program_id(1)

    @pl.when(k == 0)
    def _():
        acc_ref[...] = jnp.zeros_like(acc_ref)

    x = _maybe_narrow(x_ref[...], w1_ref)
    h = jnp.dot(x, w1_ref[...], preferred_element_type=jnp.float32)
    g = jnp.maximum(h + b1_ref[...], 0.0)                       # ReLU
    acc_ref[...] += jnp.dot(g.astype(w2_ref.dtype), w2_ref[...],
                            preferred_element_type=jnp.float32)

    @pl.when(k == pl.num_programs(1) - 1)
    def _():
        o_ref[...] = (acc_ref[...] + b2_ref[...]).astype(o_ref.dtype)


def _ffn_kernel_single(x_ref, w1_ref, b1_ref, w2_ref, b2_ref, o_ref):
    """Ungated FFN, whole d_ff in one chunk: direct write, no accumulator."""
    x = _maybe_narrow(x_ref[...], w1_ref)
    h = jnp.dot(x, w1_ref[...], preferred_element_type=jnp.float32)
    g = jnp.maximum(h + b1_ref[...], 0.0)
    out = jnp.dot(g.astype(w2_ref.dtype), w2_ref[...],
                  preferred_element_type=jnp.float32)
    o_ref[...] = (out + b2_ref[...]).astype(o_ref.dtype)


def _ffn_gated_kernel(x_ref, w1_ref, b1_ref, wv_ref, bv_ref,
                      w2_ref, b2_ref, o_ref, acc_ref):
    """Gated FFN chunk k: acc += (relu(xW1+b1) * (xWv+bv)) @ W2_k."""
    k = pl.program_id(1)

    @pl.when(k == 0)
    def _():
        acc_ref[...] = jnp.zeros_like(acc_ref)

    x = _maybe_narrow(x_ref[...], w1_ref)
    h = jnp.dot(x, w1_ref[...], preferred_element_type=jnp.float32)
    v = jnp.dot(x, wv_ref[...], preferred_element_type=jnp.float32)
    g = jnp.maximum(h + b1_ref[...], 0.0) * (v + bv_ref[...])
    acc_ref[...] += jnp.dot(g.astype(w2_ref.dtype), w2_ref[...],
                            preferred_element_type=jnp.float32)

    @pl.when(k == pl.num_programs(1) - 1)
    def _():
        o_ref[...] = (acc_ref[...] + b2_ref[...]).astype(o_ref.dtype)


def _ffn_gated_kernel_single(x_ref, w1_ref, b1_ref, wv_ref, bv_ref,
                             w2_ref, b2_ref, o_ref):
    """Gated FFN, whole d_ff in one chunk: direct write, no accumulator."""
    x = _maybe_narrow(x_ref[...], w1_ref)
    h = jnp.dot(x, w1_ref[...], preferred_element_type=jnp.float32)
    v = jnp.dot(x, wv_ref[...], preferred_element_type=jnp.float32)
    g = jnp.maximum(h + b1_ref[...], 0.0) * (v + bv_ref[...])
    out = jnp.dot(g.astype(w2_ref.dtype), w2_ref[...],
                  preferred_element_type=jnp.float32)
    o_ref[...] = (out + b2_ref[...]).astype(o_ref.dtype)


# --------------------------------------------------------------------------
# Tiling helpers
# --------------------------------------------------------------------------
def _round_up(n, m):
    return ((n + m - 1) // m) * m


def _vmem_capacity_bytes():
    try:
        return int(pltpu.get_tpu_info().vmem_capacity_bytes)
    except Exception:
        return 64 * 1024 * 1024       # conservative fallback (v7x per-TC VMEM)


def _choose_tk(d_ff, target):
    """Pick a 128-aligned d_ff chunk size.  Returns (tk, d_ff_padded)."""
    if d_ff <= target:
        return d_ff, d_ff                     # single chunk == full dim (allowed)
    target = max(128, (target // 128) * 128)
    c = target
    while c >= 128:                           # largest 128-aligned divisor
        if d_ff % c == 0:
            return c, d_ff
        c -= 128
    # No 128-aligned divisor: pad d_ff up to a multiple of `target`.
    return target, _round_up(d_ff, target)


def _auto_tiles(M, d_model, d_ff, xs, ws, bs, is_gated, sub,
                vmem_budget, tile_m_cap, tk_target):
    """VMEM-budget-aware (tm, tk) selection."""
    n_w = 3 if is_gated else 2       # (d_model,tk)/(tk,d_model) weight blocks/step
    n_b = 2 if is_gated else 1       # (1,tk) bias blocks/step
    n_int = 3 if is_gated else 2     # f32 (tm,tk) matmul intermediates

    tk_t = max(128, tk_target)
    while True:
        tk, d_ff_pad = _choose_tk(d_ff, tk_t)
        num_k = d_ff_pad // tk
        # Double-buffered weight/bias blocks (+ b2).
        fixed = 2 * (n_w * d_model * tk * ws + n_b * tk * bs + d_model * bs)
        per_row = (4 * d_model * xs                      # x + out, double-buffered
                   + (d_model * 4 if num_k > 1 else 0)   # f32 accumulator
                   + n_int * tk * 4)                     # matmul intermediates
        tm_max = max((vmem_budget - fixed) // per_row, 0)
        tm_max = (tm_max // sub) * sub
        if tm_max >= sub or tk_t <= 128:
            break
        tk_t = max(128, tk_t // 2)               # shrink chunk, retry
    tm_max = max(tm_max, sub)

    tm = min(tm_max, tile_m_cap, _round_up(M, sub))
    # v7x megacore: for large M make sure there are at least 2 row tiles so
    # the "parallel" axis feeds both TensorCores.
    if M >= 256 and pl.cdiv(M, tm) == 1:
        tm = _round_up(pl.cdiv(M, 2), sub)
    # Prefer a nearby tm that divides M (skips the wrapper-side x pad copy).
    if M % tm:
        for t in range(tm, max(sub, tm - 8 * sub) - 1, -sub):
            if M % t == 0:
                tm = t
                break
    return int(tm), int(tk), int(num_k), int(d_ff_pad)


# --------------------------------------------------------------------------
# Wrapper
# --------------------------------------------------------------------------
def feed_forward(x, params, *, is_gated=False, tile_m=1024, block_dff=512):
    """FeedForward forward pass (eval mode).  x: (batch, seq, d_model)."""
    batch, seq, d_model = x.shape
    d_ff = params["w1"].shape[1]
    M = batch * seq

    xs = x.dtype.itemsize
    ws = params["w1"].dtype.itemsize
    bs = params["b1"].dtype.itemsize
    sub = {4: 8, 2: 16, 1: 32}.get(xs, 8)        # sublane multiple per dtype

    vmem_cap = _vmem_capacity_bytes()
    vmem_limit = min(int(vmem_cap * 0.85), 112 * 1024 * 1024)
    tile_budget = max(vmem_limit - 4 * 1024 * 1024, 8 * 1024 * 1024)

    tm, tk, num_k, d_ff_pad = _auto_tiles(
        M, d_model, d_ff, xs, ws, bs, is_gated, sub,
        tile_budget, tile_m, block_dff)

    num_m = int(pl.cdiv(M, tm))
    M_pad = num_m * tm

    x2 = x.reshape(M, d_model)
    if M_pad != M:
        x2 = jnp.pad(x2, ((0, M_pad - M), (0, 0)))

    w1, b1, w2, b2 = params["w1"], params["b1"], params["w2"], params["b2"]
    wv, bv = params.get("wv"), params.get("bv")
    if d_ff_pad != d_ff:
        # Rare path: no 128-aligned d_ff chunk exists -> zero-pad d_ff.
        # Zero columns/rows contribute nothing to the output.
        # TODO(synk): do this once at param-prep time, not per call.
        p = d_ff_pad - d_ff
        w1 = jnp.pad(w1, ((0, 0), (0, p)))
        b1 = jnp.pad(b1, ((0, 0), (0, p)))
        w2 = jnp.pad(w2, ((0, p), (0, 0)))
        if is_gated:
            wv = jnp.pad(wv, ((0, 0), (0, p)))
            bv = jnp.pad(bv, ((0, 0), (0, p)))

    multi = num_k > 1
    if multi:
        x_spec = pl.BlockSpec((tm, d_model), lambda i, k: (i, 0))
        o_spec = pl.BlockSpec((tm, d_model), lambda i, k: (i, 0))
        wup_spec = pl.BlockSpec((d_model, tk), lambda i, k: (0, k))
        bup_spec = pl.BlockSpec((1, tk), lambda i, k: (0, k))
        w2_spec = pl.BlockSpec((tk, d_model), lambda i, k: (k, 0))
        b2_spec = pl.BlockSpec((1, d_model), lambda i, k: (0, 0))
        grid = (num_m, num_k)
        semantics = ("parallel", "arbitrary")
        scratch = [pltpu.VMEM((tm, d_model), jnp.float32)]
        kernel = _ffn_gated_kernel if is_gated else _ffn_kernel
    else:
        x_spec = pl.BlockSpec((tm, d_model), lambda i: (i, 0))
        o_spec = pl.BlockSpec((tm, d_model), lambda i: (i, 0))
        wup_spec = pl.BlockSpec((d_model, tk), lambda i: (0, 0))
        bup_spec = pl.BlockSpec((1, tk), lambda i: (0, 0))
        w2_spec = pl.BlockSpec((tk, d_model), lambda i: (0, 0))
        b2_spec = pl.BlockSpec((1, d_model), lambda i: (0, 0))
        grid = (num_m,)
        semantics = ("parallel",)
        scratch = []
        kernel = _ffn_gated_kernel_single if is_gated else _ffn_kernel_single

    if is_gated:
        in_specs = [x_spec, wup_spec, bup_spec, wup_spec, bup_spec,
                    w2_spec, b2_spec]
        args = (x2, w1, b1, wv, bv, w2, b2)
    else:
        in_specs = [x_spec, wup_spec, bup_spec, w2_spec, b2_spec]
        args = (x2, w1, b1, w2, b2)

    # Cost estimate: weights are re-streamed once per M tile.
    up_flops = 2 * M_pad * d_model * d_ff_pad * (2 if is_gated else 1)
    down_flops = 2 * M_pad * d_ff_pad * d_model
    gate_flops = M_pad * d_ff_pad if is_gated else 0
    weight_bytes = sum(int(a.size) * a.dtype.itemsize for a in args[1:])
    act_bytes = 2 * M_pad * d_model * xs
    cost = pl.CostEstimate(
        flops=int(up_flops + down_flops + gate_flops),
        transcendentals=0,
        bytes_accessed=int(num_m * weight_bytes + act_bytes),
    )

    out2 = pl.pallas_call(
        kernel,
        out_shape=jax.ShapeDtypeStruct((M_pad, d_model), x.dtype),
        grid_spec=pltpu.PrefetchScalarGridSpec(
            num_scalar_prefetch=0,
            grid=grid,
            in_specs=in_specs,
            out_specs=o_spec,
            scratch_shapes=scratch,
        ),
        compiler_params=pltpu.CompilerParams(
            dimension_semantics=semantics,
            vmem_limit_bytes=int(vmem_limit),
        ),
        cost_estimate=cost,
    )(*args)

    if M_pad != M:
        out2 = out2[:M]
    return out2.reshape(batch, seq, d_model)


# --------------------------------------------------------------------------
# Init + reference
# --------------------------------------------------------------------------
def init_params(key, d_model, d_ff, is_gated=False, dtype=jnp.float32):
    """nn.Linear-style init (uniform +/- 1/sqrt(fan_in)); weights are W.T."""
    k1, k2, k3, k4, k5, k6 = jax.random.split(key, 6)
    bound1 = 1.0 / math.sqrt(d_model)
    bound2 = 1.0 / math.sqrt(d_ff)
    params = {
        "w1": jax.random.uniform(k1, (d_model, d_ff), dtype, -bound1, bound1),
        "b1": jax.random.uniform(k2, (1, d_ff), dtype, -bound1, bound1),
        "w2": jax.random.uniform(k3, (d_ff, d_model), dtype, -bound2, bound2),
        "b2": jax.random.uniform(k4, (1, d_model), dtype, -bound2, bound2),
    }
    if is_gated:
        params["wv"] = jax.random.uniform(k5, (d_model, d_ff), dtype,
                                          -bound1, bound1)
        params["bv"] = jax.random.uniform(k6, (1, d_ff), dtype,
                                          -bound1, bound1)
    return params


def feed_forward_ref(x, params, *, is_gated=False):
    """Pure-JAX reference matching the PyTorch forward (eval mode)."""
    g = jnp.maximum(x @ params["w1"] + params["b1"][0], 0.0)
    if is_gated:
        g = g * (x @ params["wv"] + params["bv"][0])
    return g @ params["w2"] + params["b2"][0]


# --------------------------------------------------------------------------
# Demo / correctness check
# --------------------------------------------------------------------------
if __name__ == "__main__":
    batch, seq, d_model, d_ff = 2, 8, 32, 64

    key = jax.random.PRNGKey(0)
    kx, kp, kpg = jax.random.split(key, 3)
    x = jax.random.normal(kx, (batch, seq, d_model), jnp.float32)

    # Default module config: is_grated=False, activation=ReLU, eval mode.
    params = init_params(kp, d_model, d_ff, is_gated=False)
    out = jax.block_until_ready(feed_forward(x, params, is_gated=False))
    ref = feed_forward_ref(x, params, is_gated=False)
    assert out.shape == (batch, seq, d_model)
    assert jnp.allclose(out, ref, atol=1e-5, rtol=1e-5), \
        float(jnp.abs(out - ref).max())

    # Gated variant (is_grated=True), f32.
    params_g = init_params(kpg, d_model, d_ff, is_gated=True)
    out_g = jax.block_until_ready(feed_forward(x, params_g, is_gated=True))
    ref_g = feed_forward_ref(x, params_g, is_gated=True)
    assert jnp.allclose(out_g, ref_g, atol=1e-5, rtol=1e-5), \
        float(jnp.abs(out_g - ref_g).max())

    # bf16 fast path (bf16 MXU operands, f32 accumulation) -- loose tolerance.
    xb = x.astype(jnp.bfloat16)
    params_b = jax.tree_util.tree_map(lambda p: p.astype(jnp.bfloat16),
                                      params_g)
    out_b = jax.block_until_ready(feed_forward(xb, params_b, is_gated=True))
    ref_b = feed_forward_ref(
        xb.astype(jnp.float32),
        jax.tree_util.tree_map(lambda p: p.astype(jnp.float32), params_b),
        is_gated=True)
    assert out_b.shape == (batch, seq, d_model)
    assert jnp.allclose(out_b.astype(jnp.float32), ref_b, atol=0.15, rtol=0.05)

    print("KERNEL_OK")
</pallas_src>

<mosaic_0001>
module attributes {stable_mosaic.version = 11 : i64} {
  func.func @_ffn_kernel_single(%arg0: i32, %arg1: memref<16x32xf32, #tpu.memory_space<vmem>>, %arg2: memref<32x64xf32, #tpu.memory_space<vmem>>, %arg3: memref<1x64xf32, #tpu.memory_space<vmem>>, %arg4: memref<64x32xf32, #tpu.memory_space<vmem>>, %arg5: memref<1x32xf32, #tpu.memory_space<vmem>>, %arg6: memref<16x32xf32, #tpu.memory_space<vmem>>) attributes {dimension_semantics = [#tpu.dimension_semantics<parallel>], iteration_bounds = array<i64: 1>, scalar_prefetch = 0 : i64, scratch_operands = 0 : i64, tpu.core_type = #tpu.core_type<tc>, window_params = [{transform_indices = @transform_0, window_bounds = array<i64: 16, 32>}, {pipeline_mode = #tpu.pipeline_mode<synchronous>, transform_indices = @transform_1, window_bounds = array<i64: 32, 64>}, {pipeline_mode = #tpu.pipeline_mode<synchronous>, transform_indices = @transform_2, window_bounds = array<i64: 1, 64>}, {pipeline_mode = #tpu.pipeline_mode<synchronous>, transform_indices = @transform_3, window_bounds = array<i64: 64, 32>}, {pipeline_mode = #tpu.pipeline_mode<synchronous>, transform_indices = @transform_4, window_bounds = array<i64: 1, 32>}, {transform_indices = @transform_5, window_bounds = array<i64: 16, 32>}]} {
    %c0 = arith.constant 0 : index
    %c0_0 = arith.constant 0 : index
    %0 = vector.load %arg1[%c0, %c0_0] : memref<16x32xf32, #tpu.memory_space<vmem>>, vector<16x32xf32>
    %c0_1 = arith.constant 0 : index
    %c0_2 = arith.constant 0 : index
    %1 = vector.load %arg2[%c0_1, %c0_2] : memref<32x64xf32, #tpu.memory_space<vmem>>, vector<32x64xf32>
    %cst = arith.constant dense<0.000000e+00> : vector<16x64xf32>
    %2 = tpu.matmul %0, %1, %cst {dimension_numbers = #tpu.dot_dimension_numbers<[1], [0], [0], [1], [0, 0, 1, 1], [], []>} : vector<16x32xf32>, vector<32x64xf32>, vector<16x64xf32> -> vector<16x64xf32>
    %c0_3 = arith.constant 0 : index
    %c0_4 = arith.constant 0 : index
    %3 = vector.load %arg3[%c0_3, %c0_4] : memref<1x64xf32, #tpu.memory_space<vmem>>, vector<1x64xf32>
    %4 = vector.broadcast %3 : vector<1x64xf32> to vector<16x64xf32>
    %5 = arith.addf %2, %4 : vector<16x64xf32>
    %cst_5 = arith.constant 0.000000e+00 : f32
    %6 = vector.broadcast %cst_5 : f32 to vector<16x64xf32>
    %7 = arith.maximumf %5, %6 : vector<16x64xf32>
    %c0_6 = arith.constant 0 : index
    %c0_7 = arith.constant 0 : index
    %8 = vector.load %arg4[%c0_6, %c0_7] : memref<64x32xf32, #tpu.memory_space<vmem>>, vector<64x32xf32>
    %cst_8 = arith.constant dense<0.000000e+00> : vector<16x32xf32>
    %9 = tpu.matmul %7, %8, %cst_8 {dimension_numbers = #tpu.dot_dimension_numbers<[1], [0], [0], [1], [0, 0, 1, 1], [], []>} : vector<16x64xf32>, vector<64x32xf32>, vector<16x32xf32> -> vector<16x32xf32>
    %c0_9 = arith.constant 0 : index
    %c0_10 = arith.constant 0 : index
    %10 = vector.load %arg5[%c0_9, %c0_10] : memref<1x32xf32, #tpu.memory_space<vmem>>, vector<1x32xf32>
    %11 = vector.broadcast %10 : vector<1x32xf32> to vector<16x32xf32>
    %12 = arith.addf %9, %11 : vector<16x32xf32>
    %c0_11 = arith.constant 0 : index
    %c0_12 = arith.constant 0 : index
    %13 = vector.load %arg6[%c0_11, %c0_12] : memref<16x32xf32, #tpu.memory_space<vmem>>, vector<16x32xf32>
    tpu.vector_store %arg6[%c0_11, %c0_12], %12 {strides = array<i32>} : memref<16x32xf32, #tpu.memory_space<vmem>>, vector<16x32xf32>,
    return
  }
  func.func @transform_0(%arg0: i32) -> (i32, i32) {
    %c0_i32 = arith.constant 0 : i32
    %c0_i32_0 = arith.constant 0 : i32
    return %arg0, %c0_i32 : i32, i32
  }
  func.func @transform_1(%arg0: i32) -> (i32, i32) {
    %c0_i32 = arith.constant 0 : i32
    %c0_i32_0 = arith.constant 0 : i32
    %c0_i32_1 = arith.constant 0 : i32
    return %c0_i32, %c0_i32_0 : i32, i32
  }
  func.func @transform_2(%arg0: i32) -> (i32, i32) {
    %c0_i32 = arith.constant 0 : i32
    %c0_i32_0 = arith.constant 0 : i32
    %c0_i32_1 = arith.constant 0 : i32
    return %c0_i32, %c0_i32_0 : i32, i32
  }
  func.func @transform_3(%arg0: i32) -> (i32, i32) {
    %c0_i32 = arith.constant 0 : i32
    %c0_i32_0 = arith.constant 0 : i32
    %c0_i32_1 = arith.constant 0 : i32
    return %c0_i32, %c0_i32_0 : i32, i32
  }
  func.func @transform_4(%arg0: i32) -> (i32, i32) {
    %c0_i32 = arith.constant 0 : i32
    %c0_i32_0 = arith.constant 0 : i32
    %c0_i32_1 = arith.constant 0 : i32
    return %c0_i32, %c0_i32_0 : i32, i32
  }
  func.func @transform_5(%arg0: i32) -> (i32, i32) {
    %c0_i32 = arith.constant 0 : i32
    %c0_i32_0 = arith.constant 0 : i32
    return %arg0, %c0_i32 : i32, i32
  }
}

</mosaic_0001>

<bundles_post_ra>
// kernel: tpu_custom_call.1
= control target key start
LH: loop header
LB: loop body
LE: loop exit
PB: predicated region body
PF: predicated region fallthrough
CT: control target
= control target key end

     0   :  { %s260_s0 = inlined_call_operand.vmem [shape: f32[16,32], index: 0, kind: input, shape index: {}]   ;;  %s261_s1 = inlined_call_operand.vmem [shape: f32[32,64], index: 1, kind: input, shape index: {}]   ;;  %s262_s2 = inlined_call_operand.vmem [shape: f32[1,64], index: 2, kind: input, shape index: {}]   ;;  %s263_s3 = inlined_call_operand.vmem [shape: f32[64,32], index: 3, kind: input, shape index: {}]   ;;  %s264_s4 = inlined_call_operand.vmem [shape: f32[1,32], index: 4, kind: input, shape index: {}]   ;;  %s265_s5 = inlined_call_operand.hbm [shape: f32[16,32], index: 5, kind: output, shape index: {}]  }
   0x1   :  { %v26_v0 = vld [vmem:[%s261_s1 + $0x18] sm:$0xff]  ;;  %v25_v1 = vld [vmem:[%s261_s1 + $0x10] sm:$0xff]  ;;  %v24_v2 = vld [vmem:[%s261_s1 + $0x8] sm:$0xff] }
   0x2   :  { %129 = vmatpush.msra.mxu3 %v26_v0  ;;  %50 = vmatpush.msra.mxu0 %v26_v0  ;;  %v70_v3 = vld [vmem:[%s263_s3 + $0x38] sm:$0xff]  ;;  %v69_v4 = vld [vmem:[%s263_s3 + $0x30] sm:$0xff]  ;;  %v23_v5 = vld [vmem:[%s261_s1] sm:$0xff] }
   0x3   :  { %133 = vmatpush.msra.mxu2 %v70_v3  ;;  %90 = vmatpush.msra.mxu1 %v70_v3 }
   0x4   :  { %130 = vmatpush.msra.mxu3 %v25_v1  ;;  %51 = vmatpush.msra.mxu0 %v25_v1 }
   0x5   :  { %10 = vsyncpa [#allocation3], 0  ;;  %v22_v6 = vld [vmem:[%s260_s0 + $0x8] sm:$0xff]  ;;  %vm31_vm0 = vcmask 261120   ;;  %v21_v7 = vld [vmem:[%s260_s0] sm:$0xff]  ;;  %134 = vmatpush.msra.mxu2 %v69_v4  ;;  %91 = vmatpush.msra.mxu1 %v69_v4  ;;  %vm75_vm1 = vcmask 523264  }
   0x6   :  { %131 = vmatpush.msra.mxu3 %v24_v2  ;;  %52 = vmatpush.msra.mxu0 %v24_v2  ;;  %v68_v8 = vld [vmem:[%s263_s3 + $0x28] sm:$0xff]  ;;  %v67_v9 = vld [vmem:[%s263_s3 + $0x20] sm:$0xff]  ;;  %v66_v10 = vld [vmem:[%s263_s3 + $0x18] sm:$0xff]  ;;  %s113_s25 = sshll.u32 %s265_s5, 4  ;;  %s173_s26 = smov 128   ;;  %s114_s25 = int_to_ptr.hbm [resolvable:$true] %s113_s25 }
   0x7   :  { %135 = vmatpush.msra.mxu2 %v68_v8  ;;  %92 = vmatpush.msra.mxu1 %v68_v8  ;;  %v65_v11 = vld [vmem:[%s263_s3 + $0x10] sm:$0xff]  ;;  %v64_v12 = vld [vmem:[%s263_s3 + $0x8] sm:$0xff]  ;;  %v63_v13 = vld [vmem:[%s263_s3] sm:$0xff]  ;;  %s172_s3 = smov [#allocation2]   ;;  %s174_s27 = smov 8  }
   0x8   :  { %132 = vmatpush.msra.mxu3 %v23_v5  ;;  %53 = vmatpush.msra.mxu0 %v23_v5  ;;  %v144_v14 = vld [vmem:[%s262_s2] ss:$0 sm:$0xff]  ;;  %s111_s23 = sshll.u32 %s172_s3, 4  ;;  %s112_s23 = int_to_ptr.vmem [resolvable:$true] %s111_s23 }
   0x9   :  { %126 = vmatmul.msk.f32.vlgmr.msra.gmra.mxu3 %vm31_vm0, %v22_v6  ;;  %125 = vmatmul.msk.f32.vlgmr.msra.gmra.mxu0 %vm31_vm0, %v21_v7  ;;  %v145_v21 = vld [vmem:[%s264_s4] ss:$0 sm:$0xff] }
   0xa   :  { %136 = vmatpush.msra.mxu2 %v67_v9  ;;  %93 = vmatpush.msra.mxu1 %v67_v9 }
   0xc   :  { %137 = vmatpush.msra.mxu2 %v66_v10  ;;  %94 = vmatpush.msra.mxu1 %v66_v10 }
   0xe   :  { %138 = vmatpush.msra.mxu2 %v65_v11  ;;  %95 = vmatpush.msra.mxu1 %v65_v11 }
  0x10   :  { %139 = vmatpush.msra.mxu2 %v64_v12  ;;  %96 = vmatpush.msra.mxu1 %v64_v12 }
  0x12   :  { %140 = vmatpush.msra.mxu2 %v63_v13  ;;  %97 = vmatpush.msra.mxu1 %v63_v13 }
  0x86   :  { %v55_v15 = vpop.f32.mrf.mxu0 }
  0x87   :  { %v56_v16 = vadd.f32 %v144_v14, %v55_v15 }
  0x89   :  { %v61_v17 = vmax.f32 %v56_v16, 0.0 }
  0x8b   :  { %127 = vmatmul.msk.f32.vlgmr.msra.gmra.mxu1 %vm75_vm1, %v61_v17 }
  0x8c   :  { %v58_v18 = vpop.f32.mrf.mxu3 }
  0x8d   :  { %v59_v19 = vadd.f32 %v144_v14, %v58_v18 }
  0x8f   :  { %v62_v20 = vmax.f32 %v59_v19, 0.0 }
  0x91   :  { %128 = vmatmul.msk.f32.vlgmr.msra.gmra.mxu2 %vm75_vm1, %v62_v20 }
 0x108   :  { %v99_v22 = vpop.f32.mrf.mxu1 }
 0x109   :  { %v100_v23 = vadd.f32 %v145_v21, %v99_v22 }
 0x10b   :  { %105 = vst.msk [vmem:[#allocation2] sm:$0xff] %vm31_vm0, %v100_v23 }
 0x114   :  { %v102_v24 = vpop.f32.mrf.mxu2 }
 0x115   :  { %v103_v25 = vadd.f32 %v145_v21, %v102_v24 }
 0x117   :  { %106 = vst.msk [vmem:[#allocation2 + $0x8] sm:$0xff] %vm31_vm0, %v103_v25 }
 0x118   :  { %119 = dma.vmem_to_hbm [thread:$0]  %s112_s23, 256, %s114_s25, [#allocation3], %s173_s26, %s173_s26, %s174_s27  }
 0x119   :  { %170 = dma.done.wait [#allocation3], 256  }
 0x11a   :  { %171 = vsyncadd [#allocation3], 4294967040 }
 0x11b   :  { %124 = vsyncpa [#allocation3], 1 }

</bundles_post_ra>
